<compile_context>
chip_gen: v5e
topology: v5e:2x2
jax: 0.10.0
libtpu: 0.0.40
codegen_flags: <defaults>
</compile_context>

<pallas_src>
import functools
import math

import jax
import jax.numpy as jnp
from jax.experimental import pallas as pl
from jax.experimental.pallas import tpu as pltpu


def _tpu_generation_params():
    """Return (block_bytes_cap, vmem_limit_bytes) chosen per TPU generation."""
    vmem_cap = None
    try:
        info = pltpu.get_tpu_info()
        for attr in ("vmem_capacity_bytes", "vmem_size_bytes", "vmem_bytes"):
            v = getattr(info, attr, None)
            if v:
                vmem_cap = int(v)
                break
    except Exception:
        vmem_cap = None
    if vmem_cap is None:
        try:
            kind = jax.devices()[0].device_kind.lower()
            if "v5" in kind or "v6" in kind:
                vmem_cap = 128 * 1024 * 1024
        except Exception:
            pass
    if vmem_cap is not None and vmem_cap >= 96 * 1024 * 1024:
        # v5e / v6e: 128 MiB physical VMEM -> big blocks, 64 MiB scoped limit.
        return 8 * 1024 * 1024, 64 * 1024 * 1024
    # v7x (64 MiB physical) or unknown: safe on every generation.
    return 4 * 1024 * 1024, 48 * 1024 * 1024


def _rmsnorm_kernel(x_ref, g_ref, o_ref, *, eps2):
    """Plain path: feature axis maps directly to lanes (dim % 128 == 0)."""
    xf = x_ref[...].astype(jnp.float32)                  # (RB, D)
    ss = jnp.sum(xf * xf, axis=-1, keepdims=True)        # (RB, 1)
    inv = jax.lax.rsqrt(jnp.maximum(ss, eps2))           # == 1 / max(||x||, eps)
    # g_ref already holds gamma * sqrt(D).
    o_ref[...] = (xf * (inv * g_ref[...])).astype(o_ref.dtype)
    # TODO(synk): for bf16 inputs the final scale could be applied in native
    # dtype to shrink the f32 working set further (slight precision trade).


def _rmsnorm_packed_kernel(x_ref, g_ref, o_ref, *, eps2, dim, groups):
    """Lane-dense path: G = 128 // gcd(dim, 128) rows packed along lanes."""
    width = dim * groups
    xf = x_ref[...].astype(jnp.float32)                  # (RB, G*D)
    # 0/1 group-indicator matrices, generated in-kernel (no HBM inputs, no div).
    lane = jax.lax.broadcasted_iota(jnp.int32, (width, groups), 0)
    lo = jax.lax.broadcasted_iota(jnp.int32, (width, groups), 1) * dim
    m = ((lane >= lo) & (lane < lo + dim)).astype(jnp.float32)        # (G*D, G)
    lane_t = jax.lax.broadcasted_iota(jnp.int32, (groups, width), 1)
    lo_t = jax.lax.broadcasted_iota(jnp.int32, (groups, width), 0) * dim
    mt = ((lane_t >= lo_t) & (lane_t < lo_t + dim)).astype(jnp.float32)  # (G, G*D)
    # Per-lane-group (i.e. per original row) sum of squares via MXU.
    ss = jnp.dot(xf * xf, m, preferred_element_type=jnp.float32,
                 precision=jax.lax.Precision.HIGHEST)     # (RB, G)
    inv = jax.lax.rsqrt(jnp.maximum(ss, eps2))            # (RB, G)
    # Broadcast each group's inverse norm back across its D lanes.
    inv_full = jnp.dot(inv, mt, preferred_element_type=jnp.float32,
                       precision=jax.lax.Precision.HIGHEST)  # (RB, G*D)
    o_ref[...] = (xf * inv_full * g_ref[...]).astype(o_ref.dtype)


def rmsnorm(x, gamma, *, eps=1e-12, block_bytes=None, vmem_limit_bytes=None):
    """RMSNorm over the last axis of x, matching the PyTorch module."""
    orig_shape = x.shape
    dim = orig_shape[-1]
    assert gamma.shape == (dim,)

    rows = 1
    for s in orig_shape[:-1]:
        rows *= s

    default_block, default_vlimit = _tpu_generation_params()
    if block_bytes is None:
        block_bytes = default_block
    if vmem_limit_bytes is None:
        vmem_limit_bytes = default_vlimit

    # Pre-scale gamma by sqrt(dim) once, outside the kernel.
    g_scaled = gamma.astype(jnp.float32) * jnp.float32(float(dim) ** 0.5)
    eps2 = float(eps) ** 2

    itemsize = jnp.dtype(x.dtype).itemsize
    sublane = max(8, 32 // max(1, itemsize))   # 8 f32 / 16 bf16 / 32 int8-fp8

    # Lane-dense packing: pack G rows so width = G*dim is a multiple of 128.
    G = 128 // math.gcd(dim, 128)
    packed = G > 1
    width = G * dim

    x2 = x.reshape(rows, dim)
    if packed:
        n_rows = pl.cdiv(rows, G)
        pad = n_rows * G - rows
        if pad:
            # Tiny (< G rows) pad so rows regroup into packed rows; padded
            # rows produce exactly 0 and are sliced off below.
            x2 = jnp.pad(x2, ((0, pad), (0, 0)))
        xk = x2.reshape(n_rows, width)            # free: contiguous row merge
        gk = jnp.tile(g_scaled.reshape(1, dim), (1, G))
        kernel = functools.partial(_rmsnorm_packed_kernel,
                                   eps2=eps2, dim=dim, groups=G)
    else:
        n_rows = rows
        xk = x2
        gk = g_scaled.reshape(1, dim)
        kernel = functools.partial(_rmsnorm_kernel, eps2=eps2)

    # Row-block sizing: per-block input-byte cap AND a VMEM budget counting
    # double-buffered in+out blocks plus ~3 f32 block-sized intermediates.
    bytes_per_row_in = max(1, width * itemsize)
    cap_rows = max(sublane, block_bytes // bytes_per_row_in)
    per_row_vmem = max(1, width * (4 * itemsize + 12))
    vmem_rows = max(sublane, (3 * vmem_limit_bytes // 4) // per_row_vmem)
    row_block = min(cap_rows, vmem_rows)
    row_block = max(sublane, (row_block // sublane) * sublane)

    if row_block >= n_rows:
        row_block = n_rows        # single full-array block (always legal)
        grid = 1
    else:
        grid = pl.cdiv(n_rows, row_block)   # trailing partial block is masked

    out = pl.pallas_call(
        kernel,
        out_shape=jax.ShapeDtypeStruct((n_rows, width), x.dtype),
        grid_spec=pltpu.PrefetchScalarGridSpec(
            num_scalar_prefetch=0,
            grid=(grid,),
            in_specs=[
                pl.BlockSpec((row_block, width), lambda i: (i, 0)),
                pl.BlockSpec((1, width), lambda i: (0, 0)),
            ],
            out_specs=pl.BlockSpec((row_block, width), lambda i: (i, 0)),
        ),
        compiler_params=pltpu.CompilerParams(
            dimension_semantics=("parallel",),
            vmem_limit_bytes=vmem_limit_bytes,
        ),
    )(xk, gk)

    if packed:
        out = out.reshape(n_rows * G, dim)
        if n_rows * G != rows:
            out = out[:rows]
    return out.reshape(orig_shape)


def _reference(x, gamma, eps=1e-12):
    xf = x.astype(jnp.float32)
    norm = jnp.sqrt(jnp.sum(xf * xf, axis=-1, keepdims=True))
    y = xf / jnp.maximum(norm, eps)
    return (y * (x.shape[-1] ** 0.5) * gamma.astype(jnp.float32)).astype(x.dtype)


if __name__ == "__main__":
    key = jax.random.PRNGKey(0)
    k1, k2, k3, k4 = jax.random.split(key, 4)

    # Module: RMSNorm(dim=32); input (batch=2, seq=8, hidden=32).
    dim = 32
    x = jax.random.normal(k1, (2, 8, dim), dtype=jnp.float32)
    gamma = jnp.ones((dim,), dtype=jnp.float32)   # nn.Parameter(torch.ones(dim))
    y = rmsnorm(x, gamma)
    jax.block_until_ready(y)
    assert jnp.allclose(y, _reference(x, gamma), atol=1e-5, rtol=1e-5)

    # Plain path (dim % 128 == 0) exercising a masked partial trailing block.
    dim2 = 256
    x2 = jax.random.normal(k2, (3, 17, dim2), dtype=jnp.float32)
    g2 = 1.0 + 0.1 * jax.random.normal(k3, (dim2,), dtype=jnp.float32)
    y2 = rmsnorm(x2, g2, block_bytes=16 * 1024)   # force several row blocks
    jax.block_until_ready(y2)
    assert jnp.allclose(y2, _reference(x2, g2), atol=1e-5, rtol=1e-5)

    # Generalized lane-dense packing (dim=48 -> G=8, width=384) with row pad.
    dim3 = 48
    x3 = jax.random.normal(k4, (2, 5, dim3), dtype=jnp.float32)
    g3 = jnp.ones((dim3,), dtype=jnp.float32)
    y3 = rmsnorm(x3, g3)
    jax.block_until_ready(y3)
    assert jnp.allclose(y3, _reference(x3, g3), atol=1e-5, rtol=1e-5)

    print("KERNEL_OK")
</pallas_src>

<mosaic_0001>
module attributes {stable_mosaic.version = 11 : i64} {
  func.func @_rmsnorm_packed_kernel(%arg0: i32, %arg1: memref<4x128xf32, #tpu.memory_space<vmem>>, %arg2: memref<1x128xf32, #tpu.memory_space<vmem>>, %arg3: memref<4x128xf32, #tpu.memory_space<vmem>>) attributes {dimension_semantics = [#tpu.dimension_semantics<parallel>], iteration_bounds = array<i64: 1>, scalar_prefetch = 0 : i64, scratch_operands = 0 : i64, tpu.core_type = #tpu.core_type<tc>, window_params = [{transform_indices = @transform_0, window_bounds = array<i64: 4, 128>}, {pipeline_mode = #tpu.pipeline_mode<synchronous>, transform_indices = @transform_1, window_bounds = array<i64: 1, 128>}, {transform_indices = @transform_2, window_bounds = array<i64: 4, 128>}]} {
    %c0 = arith.constant 0 : index
    %c0_0 = arith.constant 0 : index
    %0 = vector.load %arg1[%c0, %c0_0] : memref<4x128xf32, #tpu.memory_space<vmem>>, vector<4x128xf32>
    %1 = tpu.iota {dimensions = array<i32: 0>} : vector<128x4xi32>
    %2 = tpu.iota {dimensions = array<i32: 1>} : vector<128x4xi32>
    %c32_i32 = arith.constant 32 : i32
    %3 = vector.broadcast %c32_i32 : i32 to vector<128x4xi32>
    %4 = arith.muli %2, %3 : vector<128x4xi32>
    %5 = arith.cmpi sge, %1, %4 : vector<128x4xi32>
    %c32_i32_1 = arith.constant 32 : i32
    %6 = vector.broadcast %c32_i32_1 : i32 to vector<128x4xi32>
    %7 = arith.addi %4, %6 : vector<128x4xi32>
    %8 = arith.cmpi slt, %1, %7 : vector<128x4xi32>
    %9 = arith.andi %5, %8 : vector<128x4xi1>
    %10 = arith.extui %9 : vector<128x4xi1> to vector<128x4xi32>
    %11 = arith.sitofp %10 : vector<128x4xi32> to vector<128x4xf32>
    %12 = tpu.iota {dimensions = array<i32: 1>} : vector<4x128xi32>
    %13 = tpu.iota {dimensions = array<i32: 0>} : vector<4x128xi32>
    %c32_i32_2 = arith.constant 32 : i32
    %14 = vector.broadcast %c32_i32_2 : i32 to vector<4x128xi32>
    %15 = arith.muli %13, %14 : vector<4x128xi32>
    %16 = arith.cmpi sge, %12, %15 : vector<4x128xi32>
    %c32_i32_3 = arith.constant 32 : i32
    %17 = vector.broadcast %c32_i32_3 : i32 to vector<4x128xi32>
    %18 = arith.addi %15, %17 : vector<4x128xi32>
    %19 = arith.cmpi slt, %12, %18 : vector<4x128xi32>
    %20 = arith.andi %16, %19 : vector<4x128xi1>
    %21 = arith.extui %20 : vector<4x128xi1> to vector<4x128xi32>
    %22 = arith.sitofp %21 : vector<4x128xi32> to vector<4x128xf32>
    %23 = arith.mulf %0, %0 : vector<4x128xf32>
    %cst = arith.constant dense<0.000000e+00> : vector<4x4xf32>
    %24 = tpu.matmul %23, %11, %cst {dimension_numbers = #tpu.dot_dimension_numbers<[1], [0], [0], [1], [0, 0, 1, 1], [], []>, precision = #tpu.contract_precision<fp32>} : vector<4x128xf32>, vector<128x4xf32>, vector<4x4xf32> -> vector<4x4xf32>
    %cst_4 = arith.constant 1.000000e-24 : f32
    %25 = vector.broadcast %cst_4 : f32 to vector<4x4xf32>
    %26 = arith.maximumf %24, %25 : vector<4x4xf32>
    %27 = math.rsqrt %26 : vector<4x4xf32>
    %cst_5 = arith.constant dense<0.000000e+00> : vector<4x128xf32>
    %28 = tpu.matmul %27, %22, %cst_5 {dimension_numbers = #tpu.dot_dimension_numbers<[1], [0], [0], [1], [0, 0, 1, 1], [], []>, precision = #tpu.contract_precision<fp32>} : vector<4x4xf32>, vector<4x128xf32>, vector<4x128xf32> -> vector<4x128xf32>
    %29 = arith.mulf %0, %28 : vector<4x128xf32>
    %c0_6 = arith.constant 0 : index
    %c0_7 = arith.constant 0 : index
    %30 = vector.load %arg2[%c0_6, %c0_7] : memref<1x128xf32, #tpu.memory_space<vmem>>, vector<1x128xf32>
    %31 = vector.broadcast %30 : vector<1x128xf32> to vector<4x128xf32>
    %32 = arith.mulf %29, %31 : vector<4x128xf32>
    %c0_8 = arith.constant 0 : index
    %c0_9 = arith.constant 0 : index
    %33 = vector.load %arg3[%c0_8, %c0_9] : memref<4x128xf32, #tpu.memory_space<vmem>>, vector<4x128xf32>
    tpu.vector_store %arg3[%c0_8, %c0_9], %32 {strides = array<i32>} : memref<4x128xf32, #tpu.memory_space<vmem>>, vector<4x128xf32>,
    return
  }
  func.func @transform_0(%arg0: i32) -> (i32, i32) {
    %c0_i32 = arith.constant 0 : i32
    %c0_i32_0 = arith.constant 0 : i32
    return %arg0, %c0_i32 : i32, i32
  }
  func.func @transform_1(%arg0: i32) -> (i32, i32) {
    %c0_i32 = arith.constant 0 : i32
    %c0_i32_0 = arith.constant 0 : i32
    %c0_i32_1 = arith.constant 0 : i32
    return %c0_i32, %c0_i32_0 : i32, i32
  }
  func.func @transform_2(%arg0: i32) -> (i32, i32) {
    %c0_i32 = arith.constant 0 : i32
    %c0_i32_0 = arith.constant 0 : i32
    return %arg0, %c0_i32 : i32, i32
  }
}

</mosaic_0001>

<bundles_post_ra>
// kernel: tpu_custom_call.1
= control target key start
LH: loop header
LB: loop body
LE: loop exit
PB: predicated region body
PF: predicated region fallthrough
CT: control target
= control target key end

     0   :  { %7 = vsyncpa [#allocation3], 0  ;;  %s1372_s0 = inlined_call_operand.hbm [shape: f32[4,128], index: 0, kind: input, shape index: {}]   ;;  %s1373_s1 = inlined_call_operand.hbm [shape: f32[1,128], index: 1, kind: input, shape index: {}]   ;;  %s1374_s2 = inlined_call_operand.hbm [shape: f32[4,128], index: 2, kind: output, shape index: {}]  }
   0x1   :  { %8 = vsyncpa [#allocation6], 0 }
   0x2   :  { %9 = vsyncpa [#allocation4], 0  ;;  %s15_s11 = sshll.u32 %s1372_s0, 4  ;;  %s835_s12 = smov [#allocation2]   ;;  %s16_s11 = int_to_ptr.hbm [resolvable:$true] %s15_s11 }
   0x3   :  { %s17_s13 = sshll.u32 %s835_s12, 4  ;;  %s26_s16 = sshll.u32 %s1373_s1, 4  ;;  %s18_s13 = int_to_ptr.vmem [resolvable:$true] %s17_s13  ;;  %s27_s16 = int_to_ptr.hbm [resolvable:$true] %s26_s16 }
   0x4   :  { %20 = dma.hbm_to_vmem [thread:$0]  %s16_s11, 64, %s18_s13, [#allocation3]  }
   0x5   :  { %s836_s17 = smov [#allocation5]  }
   0x6   :  { %s28_s18 = sshll.u32 %s836_s17, 4  ;;  %s29_s18 = int_to_ptr.vmem [resolvable:$true] %s28_s18 }
   0x7   :  { %31 = dma.hbm_to_vmem [thread:$0]  %s27_s16, 16, %s29_s18, [#allocation6]  }
   0x8   :  { %829 = dma.done.wait [#allocation3], 64  }
   0x9   :  { %830 = vsyncadd [#allocation3], 4294967232  ;;  %v41_v0 = vlaneseq }
   0xa   :  { %831 = dma.done.wait [#allocation6], 16  }
   0xb   :  { %832 = vsyncadd [#allocation6], 4294967280  ;;  %v861_v1 = vshrl.u32 %v41_v0, 7  ;;  %v863_v2 = vand.u32 127, %v41_v0  ;;  %v837_v14 = vmov 1.0   ;;  %v1379_v16 = vmov 0.0  }
   0xc   :  { %v1392_v37 = vmov 0  ;;  %v1394_v42 = vmov 0  ;;  %v1396_v52 = vmov 0  ;;  %v1398_v57 = vmov 0  ;;  %s839_s0 = smov [#allocation7]   ;;  %s670_s21 = sshll.u32 %s1374_s2, 4  ;;  %s671_s21 = int_to_ptr.hbm [resolvable:$true] %s670_s21 }
   0xd   :  { %v57_v3 = vadd.s32 120, %v861_v1  ;;  %v867_v4 = vmul.u32 32, %v863_v2  ;;  %v56_v5 = vadd.s32 112, %v861_v1  ;;  %v55_v6 = vadd.s32 104, %v861_v1  ;;  %s668_s1 = sshll.u32 %s839_s0, 4  ;;  %s669_s1 = int_to_ptr.vmem [resolvable:$true] %s668_s1 }
   0xe   :  { %v54_v7 = vadd.s32 96, %v861_v1  ;;  %v53_v8 = vadd.s32 88, %v861_v1  ;;  %v52_v9 = vadd.s32 80, %v861_v1  ;;  %v51_v10 = vadd.s32 72, %v861_v1 }
   0xf   :  { %vm76_vm0 = vcmp.ge.s32.totalorder %v57_v3, %v867_v4  ;;  %v877_v11 = vadd.s32 32, %v867_v4  ;;  %vm75_vm1 = vcmp.ge.s32.totalorder %v56_v5, %v867_v4  ;;  %vm74_vm2 = vcmp.ge.s32.totalorder %v55_v6, %v867_v4 }
  0x10   :  { %vm73_vm3 = vcmp.ge.s32.totalorder %v54_v7, %v867_v4  ;;  %vm72_vm4 = vcmp.ge.s32.totalorder %v53_v8, %v867_v4  ;;  %vm71_vm5 = vcmp.ge.s32.totalorder %v52_v9, %v867_v4  ;;  %vm70_vm6 = vcmp.ge.s32.totalorder %v51_v10, %v867_v4 }
  0x11   :  { %vm93_vm7 = vcmp.lt.s32.totalorder %v57_v3, %v877_v11  ;;  %vm92_vm8 = vcmp.lt.s32.totalorder %v56_v5, %v877_v11  ;;  %vm91_vm9 = vcmp.lt.s32.totalorder %v55_v6, %v877_v11  ;;  %vm90_vm10 = vcmp.lt.s32.totalorder %v54_v7, %v877_v11 }
  0x12   :  { %vm889_vm11 = vmand %vm76_vm0, %vm93_vm7  ;;  %vm89_vm12 = vcmp.lt.s32.totalorder %v53_v8, %v877_v11  ;;  %vm88_vm13 = vcmp.lt.s32.totalorder %v52_v9, %v877_v11  ;;  %vm87_vm14 = vcmp.lt.s32.totalorder %v51_v10, %v877_v11  ;;  %v50_v13 = vadd.s32 64, %v861_v1 }
  0x13   :  { %698 = vmatpush.msk.msra.mxu0 %vm889_vm11, %v837_v14  ;;  %vm902_vm15 = vmand %vm75_vm1, %vm92_vm8  ;;  %v696_v17 = vsel %vm889_vm11, 1.0, %v1379_v16  ;;  %v49_v18 = vadd.s32 56, %v861_v1  ;;  %v48_v19 = vadd.s32 48, %v861_v1  ;;  %v912_v20 = vadd.s32 40, %v861_v1  ;;  %714 = vmatpush.msk.msra.mxu3 %vm889_vm11, %v837_v14 }
  0x14   :  { %vm921_vm0 = vmand %vm74_vm2, %vm91_vm9  ;;  %v925_v22 = vsub.f32 %v696_v17, %v696_v17  ;;  %v695_v23 = vsel %vm902_vm15, 1.0, %v1379_v16  ;;  %vm69_vm1 = vcmp.ge.s32.totalorder %v50_v13, %v867_v4  ;;  %vm86_vm7 = vcmp.lt.s32.totalorder %v50_v13, %v877_v11 }
  0x15   :  { %699 = vmatpush.msk.msra.mxu0 %vm902_vm15, %v837_v14  ;;  %vm939_vm2 = vmand %vm73_vm3, %vm90_vm10  ;;  %v943_v25 = vsub.f32 %v695_v23, %v695_v23  ;;  %v694_v26 = vsel %vm921_vm0, 1.0, %v1379_v16  ;;  %vm68_vm8 = vcmp.ge.s32.totalorder %v49_v18, %v867_v4  ;;  %vm85_vm9 = vcmp.lt.s32.totalorder %v49_v18, %v877_v11  ;;  %715 = vmatpush.msk.msra.mxu3 %vm902_vm15, %v837_v14 }
  0x16   :  { %v193_v27 = vand.u32 4294901760, %v925_v22  ;;  %vm958_vm3 = vmand %vm72_vm4, %vm89_vm12  ;;  %v962_v29 = vsub.f32 %v694_v26, %v694_v26  ;;  %v693_v30 = vsel %vm939_vm2, 1.0, %v1379_v16  ;;  %vm67_vm10 = vcmp.ge.s32.totalorder %v48_v19, %v867_v4  ;;  %294 = vmatpush.msra.mxu2 %v925_v22 }
  0x17   :  { %700 = vmatpush.msk.msra.mxu0 %vm921_vm0, %v837_v14  ;;  %v199_v31 = vand.u32 4294901760, %v943_v25  ;;  %vm977_vm4 = vmand %vm71_vm5, %vm88_vm13  ;;  %v981_v33 = vsub.f32 %v693_v30, %v693_v30  ;;  %v692_v34 = vsel %vm958_vm3, 1.0, %v1379_v16  ;;  %vm84_vm12 = vcmp.lt.s32.totalorder %v48_v19, %v877_v11  ;;  %716 = vmatpush.msk.msra.mxu3 %vm921_vm0, %v837_v14 }
  0x18   :  { %v194_v35 = vsub.f32 %v925_v22, %v193_v27  ;;  %v205_v36 = vand.u32 4294901760, %v962_v29  ;;  %vm998_vm5 = vmand %vm70_vm6, %vm87_vm14  ;;  %v1002_v38 = vsub.f32 %v692_v34, %v692_v34  ;;  %v691_v39 = vsel %vm977_vm4, 1.0, %v1379_v16  ;;  %297 = vmatpush.msra.mxu2 %v943_v25 }
  0x19   :  { %v1393_v37 = vsel %vm998_vm5, 4294967295, %v1392_v37  ;;  %701 = vmatpush.msk.msra.mxu0 %vm939_vm2, %v837_v14  ;;  %v200_v40 = vsub.f32 %v943_v25, %v199_v31  ;;  %v211_v41 = vand.u32 4294901760, %v981_v33  ;;  %vm1019_vm6 = vmand %vm69_vm1, %vm86_vm7  ;;  %v1023_v43 = vsub.f32 %v691_v39, %v691_v39  ;;  %717 = vmatpush.msk.msra.mxu3 %vm939_vm2, %v837_v14 }
  0x1a   :  { %v1395_v42 = vsel %vm1019_vm6, 4294967295, %v1394_v42  ;;  %v690_v44 = vsel %vm998_vm5, 1.0, %v1379_v16  ;;  %v195_v45 = vand.u32 4294901760, %v194_v35  ;;  %v206_v46 = vsub.f32 %v962_v29, %v205_v36  ;;  %300 = vmatpush.msra.mxu2 %v962_v29  ;;  %vm1049_vm13 = vmand %vm68_vm8, %vm85_vm9 }
  0x1b   :  { %v217_v47 = vand.u32 4294901760, %v1002_v38  ;;  %v1035_v48 = vsub.f32 %v690_v44, %v690_v44  ;;  %v201_v49 = vand.u32 4294901760, %v200_v40  ;;  %702 = vmatpush.msk.msra.mxu0 %vm958_vm3, %v837_v14  ;;  %v212_v50 = vsub.f32 %v981_v33, %v211_v41  ;;  %718 = vmatpush.msk.msra.mxu3 %vm958_vm3, %v837_v14  ;;  %vm1067_vm14 = vmand %vm67_vm10, %vm84_vm12 }
  0x1c   :  { %v223_v51 = vand.u32 4294901760, %v1023_v43  ;;  %v1397_v52 = vsel %vm1049_vm13, 4294967295, %v1396_v52  ;;  %v689_v53 = vsel %vm1019_vm6, 1.0, %v1379_v16  ;;  %196 = vmatpush.msra.mxu1 %v195_v45  ;;  %v207_v54 = vand.u32 4294901760, %v206_v46  ;;  %303 = vmatpush.msra.mxu2 %v981_v33 }
  0x1d   :  { %v218_v55 = vsub.f32 %v1002_v38, %v217_v47  ;;  %v229_v56 = vand.u32 4294901760, %v1035_v48  ;;  %v1399_v57 = vsel %vm1067_vm14, 4294967295, %v1398_v57  ;;  %v1071_v58 = vsub.f32 %v689_v53, %v689_v53  ;;  %703 = vmatpush.msk.msra.mxu0 %vm977_vm4, %v837_v14  ;;  %719 = vmatpush.msk.msra.mxu3 %vm977_vm4, %v837_v14 }
  0x1e   :  { %vm66_vm1 = vcmp.ge.s32.totalorder %v912_v20, %v867_v4  ;;  %vm83_vm7 = vcmp.lt.s32.totalorder %v912_v20, %v877_v11  ;;  %202 = vmatpush.msra.mxu1 %v201_v49  ;;  %v213_v59 = vand.u32 4294901760, %v212_v50  ;;  %v224_v60 = vsub.f32 %v1023_v43, %v223_v51  ;;  %306 = vmatpush.msra.mxu2 %v1002_v38  ;;  %v1173_v50 = vld [vmem:[#allocation2] sm:$0xf] }
  0x1f   :  { %v235_v61 = vand.u32 4294901760, %v1071_v58  ;;  %vm1088_vm8 = vmand %vm66_vm1, %vm83_vm7  ;;  %v688_v63 = vsel %vm1049_vm13, 1.0, %v1379_v16  ;;  %704 = vmatpush.msk.msra.mxu0 %vm998_vm5, %v837_v14  ;;  %v219_v0 = vand.u32 4294901760, %v218_v55  ;;  %v46_v5 = vadd.s32 32, %v861_v1  ;;  %720 = vmatpush.msk.msra.mxu3 %vm998_vm5, %v837_v14 }
  0x20   :  { %v1099_v3 = vsub.f32 %v688_v63, %v688_v63  ;;  %v687_v6 = vsel %vm1067_vm14, 1.0, %v1379_v16  ;;  %208 = vmatpush.msra.mxu1 %v207_v54  ;;  %v230_v7 = vsub.f32 %v1035_v48, %v229_v56  ;;  %v45_v10 = vadd.s32 24, %v861_v1  ;;  %309 = vmatpush.msra.mxu2 %v1023_v43 }
  0x21   :  { %v236_v8 = vsub.f32 %v1071_v58, %v235_v61  ;;  %v1114_v9 = vsub.f32 %v687_v6, %v687_v6  ;;  %705 = vmatpush.msk.msra.mxu0 %vm1019_vm6, %v837_v14  ;;  %vm65_vm9 = vcmp.ge.s32.totalorder %v46_v5, %v867_v4  ;;  %vm82_vm10 = vcmp.lt.s32.totalorder %v46_v5, %v877_v11 }
  0x22   :  { %v241_v13 = vand.u32 4294901760, %v1099_v3  ;;  %v686_v17 = vsel %vm1088_vm8, 1.0, %v1379_v16  ;;  %721 = vmatpush.msk.msra.mxu3 %vm1019_vm6, %v837_v14  ;;  %214 = vmatpush.msra.mxu1 %v213_v59  ;;  %v225_v18 = vand.u32 4294901760, %v224_v60  ;;  %vm1130_vm12 = vmand %vm65_vm9, %vm82_vm10  ;;  %vm64_vm1 = vcmp.ge.s32.totalorder %v45_v10, %v867_v4 }
  0x23   :  { %v247_v20 = vand.u32 4294901760, %v1114_v9  ;;  %vm81_vm7 = vcmp.lt.s32.totalorder %v45_v10, %v877_v11  ;;  %312 = vmatpush.msra.mxu2 %v1035_v48  ;;  %706 = vmatpush.msk.msra.mxu0 %vm1049_vm13, %v837_v14  ;;  %v1148_v30 = vsub.f32 %v686_v17, %v686_v17  ;;  %v44_v34 = vadd.s32 16, %v861_v1 }
  0x24   :  { %v242_v23 = vsub.f32 %v1099_v3, %v241_v13  ;;  %vm1144_vm9 = vmand %vm64_vm1, %vm81_vm7  ;;  %v685_v35 = vsel %vm1130_vm12, 1.0, %v1379_v16  ;;  %722 = vmatpush.msk.msra.mxu3 %vm1049_vm13, %v837_v14  ;;  %220 = vmatpush.msra.mxu1 %v219_v0  ;;  %v231_v39 = vand.u32 4294901760, %v230_v7  ;;  %v43_v44 = vadd.s32 8, %v861_v1 }
  0x25   :  { %v1157_v40 = vsub.f32 %v685_v35, %v685_v35  ;;  %v684_v45 = vsel %vm1144_vm9, 1.0, %v1379_v16  ;;  %315 = vmatpush.msra.mxu2 %v1071_v58  ;;  %707 = vmatpush.msk.msra.mxu0 %vm1067_vm14, %v837_v14  ;;  %v237_v46 = vand.u32 4294901760, %v236_v8  ;;  %v253_v49 = vand.u32 4294901760, %v1148_v30 }
  0x26   :  { %vm63_vm10 = vcmp.ge.s32.totalorder %v44_v34, %v867_v4  ;;  %vm80_vm1 = vcmp.lt.s32.totalorder %v44_v34, %v877_v11  ;;  %723 = vmatpush.msk.msra.mxu3 %vm1067_vm14, %v837_v14  ;;  %226 = vmatpush.msra.mxu1 %v225_v18  ;;  %v248_v53 = vsub.f32 %v1114_v9, %v247_v20  ;;  %v243_v59 = vand.u32 4294901760, %v242_v23 }
  0x27   :  { %vm1178_vm7 = vmand %vm63_vm10, %vm80_vm1  ;;  %v259_v55 = vand.u32 4294901760, %v1157_v40  ;;  %vm62_vm13 = vcmp.ge.s32.totalorder %v43_v44, %v867_v4  ;;  %vm79_vm6 = vcmp.lt.s32.totalorder %v43_v44, %v877_v11  ;;  %318 = vmatpush.msra.mxu2 %v1099_v3  ;;  %708 = vmatpush.msk.msra.mxu0 %vm1088_vm8, %v837_v14  ;;  %v1193_v63 = vsub.f32 %v684_v45, %v684_v45 }
  0x28   :  { %vm1189_vm14 = vmand %vm62_vm13, %vm79_vm6  ;;  %vm61_vm10 = vcmp.ge.s32.totalorder %v861_v1, %v867_v4  ;;  %vm78_vm1 = vcmp.lt.s32.totalorder %v861_v1, %v877_v11  ;;  %232 = vmatpush.msra.mxu1 %v231_v39  ;;  %v254_v0 = vsub.f32 %v1148_v30, %v253_v49  ;;  %v683_v6 = vsel %vm1178_vm7, 1.0, %v1379_v16  ;;  %724 = vmatpush.msk.msra.mxu3 %vm1088_vm8, %v837_v14 }
  0x29   :  { %vm1202_vm5 = vmand %vm61_vm10, %vm78_vm1  ;;  %v682_v4 = vsel %vm1189_vm14, 1.0, %v1379_v16  ;;  %321 = vmatpush.msra.mxu2 %v1114_v9  ;;  %v149_v11 = vmul.f32 %v1173_v50, %v1173_v50  ;;  %709 = vmatpush.msk.msra.mxu0 %vm1130_vm12, %v837_v14  ;;  %v265_v7 = vand.u32 4294901760, %v1193_v63  ;;  %v1219_v8 = vsub.f32 %v683_v6, %v683_v6 }
  0x2a   :  { %v1221_v10 = vsub.f32 %v682_v4, %v682_v4  ;;  %238 = vmatpush.msra.mxu1 %v237_v46  ;;  %v249_v17 = vand.u32 4294901760, %v248_v53  ;;  %v260_v18 = vsub.f32 %v1157_v40, %v259_v55  ;;  %v681_v23 = vsel %vm1202_vm5, 1.0, %v1379_v16  ;;  %725 = vmatpush.msk.msra.mxu3 %vm1130_vm12, %v837_v14 }
  0x2b   :  { %324 = vmatpush.msra.mxu2 %v1148_v30  ;;  %v1233_v34 = vand.u32 4294901760, %v149_v11  ;;  %710 = vmatpush.msk.msra.mxu0 %vm1144_vm9, %v837_v14  ;;  %v271_v35 = vand.u32 4294901760, %v1219_v8  ;;  %v1239_v39 = vsub.f32 %v681_v23, %v681_v23  ;;  %v255_v44 = vand.u32 4294901760, %v254_v0 }
  0x2c   :  { %244 = vmatpush.msra.mxu1 %v243_v59  ;;  %v266_v45 = vsub.f32 %v1193_v63, %v265_v7  ;;  %v277_v46 = vand.u32 4294901760, %v1221_v10  ;;  %726 = vmatpush.msk.msra.mxu3 %vm1144_vm9, %v837_v14  ;;  %v261_v59 = vand.u32 4294901760, %v260_v18  ;;  %v142_v12 = vmul.u32 32, %v861_v1 }
  0x2d   :  { %327 = vmatpush.msra.mxu2 %v1157_v40  ;;  %v183_v53 = vsub.f32 %v149_v11, %v1233_v34  ;;  %711 = vmatpush.msk.msra.mxu0 %vm1178_vm7, %v837_v14  ;;  %v272_v0 = vsub.f32 %v1219_v8, %v271_v35  ;;  %v283_v6 = vand.u32 4294901760, %v1239_v39  ;;  %vm506_vm13 = vcmask 1043456  }
  0x2e   :  { %250 = vmatpush.msra.mxu1 %v249_v17  ;;  %727 = vmatpush.msk.msra.mxu3 %vm1178_vm7, %v837_v14  ;;  %v267_v11 = vand.u32 4294901760, %v266_v45  ;;  %v278_v17 = vsub.f32 %v1221_v10, %v277_v46  ;;  %v144_v15 = vadd.s32 32, %v142_v12 }
  0x2f   :  { %330 = vmatpush.msra.mxu2 %v1193_v63  ;;  %v184_v4 = vand.u32 4294901760, %v183_v53  ;;  %712 = vmatpush.msk.msra.mxu0 %vm1189_vm14, %v837_v14  ;;  %v273_v23 = vand.u32 4294901760, %v272_v0 }
  0x30   :  { %256 = vmatpush.msra.mxu1 %v255_v44  ;;  %728 = vmatpush.msk.msra.mxu3 %vm1189_vm14, %v837_v14  ;;  %v284_v44 = vsub.f32 %v1239_v39, %v283_v6  ;;  %v279_v16 = vand.u32 4294901760, %v278_v17 }
  0x31   :  { %333 = vmatpush.msra.mxu2 %v1219_v8  ;;  %v185_v18 = vsub.f32 %v183_v53, %v184_v4  ;;  %713 = vmatpush.msk.msra.mxu0 %vm1202_vm5, %v837_v14  ;;  %v754_v8 = vld [vmem:[#allocation5] ss:$0 sm:$0xff] }
  0x32   :  { %262 = vmatpush.msra.mxu1 %v261_v59  ;;  %729 = vmatpush.msk.msra.mxu3 %vm1202_vm5, %v837_v14  ;;  %v285_v22 = vand.u32 4294901760, %v284_v44 }
  0x33   :  { %388 = vmatpush.msrb.mxu0 %v193_v27  ;;  %v186_v45 = vand.u32 4294901760, %v185_v18  ;;  %336 = vmatpush.msra.mxu2 %v1221_v10 }
  0x34   :  { %268 = vmatpush.msra.mxu1 %v267_v11  ;;  %381 = vmatmul.f32.vlgmr.msra.gmra.mxu3 %v184_v4 }
  0x35   :  { %392 = vmatpush.msrb.mxu0 %v199_v31  ;;  %339 = vmatpush.msra.mxu2 %v1239_v39 }
  0x36   :  { %187 = vmatmul.f32.vlgmr.msra.gmra.mxu0 %v186_v45  ;;  %274 = vmatpush.msra.mxu1 %v273_v23 }
  0x37   :  { %396 = vmatpush.msrb.mxu0 %v205_v36  ;;  %342 = vmatmul.f32.vlgmr.msra.gmra.mxu2 %v183_v53 }
  0x38   :  { %280 = vmatpush.msra.mxu1 %v279_v16  ;;  %v1416_v16 = vmov 0.0  }
  0x39   :  { %400 = vmatpush.msrb.mxu0 %v211_v41 }
  0x3a   :  { %286 = vmatpush.msra.mxu1 %v285_v22 }
  0x3b   :  { %404 = vmatpush.msrb.mxu0 %v217_v47  ;;  %288 = vmatmul.f32.vlgmr.msra.gmra.mxu1 %v1233_v34 }
  0x3c   :  { %730 = vmatpush.msk.msrb.mxu1 %vm889_vm11, %v837_v14  ;;  %vm1412_vm11 = vnez %v1393_v37 }
  0x3d   :  { %408 = vmatpush.msrb.mxu0 %v223_v51 }
  0x3e   :  { %731 = vmatpush.msk.msrb.mxu1 %vm902_vm15, %v837_v14  ;;  %vm1413_vm15 = vnez %v1395_v42 }
  0x3f   :  { %412 = vmatpush.msrb.mxu0 %v229_v56 }
  0x40   :  { %732 = vmatpush.msk.msrb.mxu1 %vm921_vm0, %v837_v14  ;;  %vm1414_vm0 = vnez %v1397_v52 }
  0x41   :  { %416 = vmatpush.msrb.mxu0 %v235_v61 }
  0x42   :  { %733 = vmatpush.msk.msrb.mxu1 %vm939_vm2, %v837_v14  ;;  %vm1415_vm2 = vnez %v1399_v57 }
  0x43   :  { %420 = vmatpush.msrb.mxu0 %v241_v13 }
  0x44   :  { %734 = vmatpush.msk.msrb.mxu1 %vm958_vm3, %v837_v14  ;;  %vm143_vm3 = vcmp.ge.s32.totalorder %v863_v2, %v142_v12 }
  0x45   :  { %424 = vmatpush.msrb.mxu0 %v247_v20 }
  0x46   :  { %735 = vmatpush.msk.msrb.mxu1 %vm977_vm4, %v837_v14  ;;  %vm145_vm4 = vcmp.lt.s32.totalorder %v863_v2, %v144_v15 }
  0x47   :  { %428 = vmatpush.msrb.mxu0 %v253_v49  ;;  %vm146_vm6 = vmand %vm143_vm3, %vm145_vm4 }
  0x48   :  { %736 = vmatpush.msk.msrb.mxu1 %vm1412_vm11, %v837_v14  ;;  %v697_v21 = vsel %vm146_vm6, 1.0, %v1416_v16 }
  0x49   :  { %432 = vmatpush.msrb.mxu0 %v259_v55  ;;  %v508_v25 = vsel %vm506_vm13, %v697_v21, 0  ;;  %746 = vmatpush.msk.msrb.mxu2 %vm506_vm13, %v697_v21 }
  0x4a   :  { %737 = vmatpush.msk.msrb.mxu1 %vm1413_vm15, %v837_v14  ;;  %v552_v27 = vsub.f32 %v508_v25, %v508_v25 }
  0x4b   :  { %436 = vmatpush.msrb.mxu0 %v265_v7 }
  0x4c   :  { %738 = vmatpush.msk.msrb.mxu1 %vm1414_vm0, %v837_v14  ;;  %v553_v29 = vand.u32 4294901760, %v552_v27  ;;  %579 = vmatpush.msra.mxu2 %v552_v27 }
  0x4d   :  { %440 = vmatpush.msrb.mxu0 %v271_v35 }
  0x4e   :  { %739 = vmatpush.msk.msrb.mxu1 %vm1415_vm2, %v837_v14  ;;  %v554_v31 = vsub.f32 %v552_v27, %v553_v29 }
  0x4f   :  { %444 = vmatpush.msrb.mxu0 %v277_v46 }
  0x50   :  { %740 = vmatpush.msk.msrb.mxu1 %vm1088_vm8, %v837_v14  ;;  %v555_v33 = vand.u32 4294901760, %v554_v31  ;;  %vm502_vm8 = vcmask 31744  }
  0x51   :  { %448 = vmatpush.msrb.mxu0 %v283_v6 }
  0x52   :  { %741 = vmatpush.msk.msrb.mxu1 %vm1130_vm12, %v837_v14  ;;  %450 = vmatmul.f32.vlgmr.msrb.gmra.mxu0 %v1233_v34 }
  0x53   :  { %556 = vmatpush.msrb.mxu3 %v555_v33 }
  0x54   :  { %742 = vmatpush.msk.msrb.mxu1 %vm1144_vm9, %v837_v14 }
  0x55   :  { %747 = vmatpush.msk.msra.mxu3 %vm506_vm13, %v697_v21 }
  0x56   :  { %743 = vmatpush.msk.msrb.mxu1 %vm1178_vm7, %v837_v14 }
  0x58   :  { %744 = vmatpush.msk.msrb.mxu1 %vm1189_vm14, %v837_v14 }
  0x5a   :  { %745 = vmatpush.msk.msrb.mxu1 %vm1202_vm5, %v837_v14 }
  0x5b   :  { %487 = vmatmul.f32.vlgmr.msrb.gmra.mxu1 %v1233_v34 }
  0xb3   :  { %v188_v14 = vpop.f32.mrf.mxu0 }
  0xb7   :  { %v382_v36 = vpop.f32.mrf.mxu3 }
  0xb8   :  { %v289_v24 = vpop.f32.mrf.mxu1 }
  0xb9   :  { %v290_v28 = vadd.f32 %v289_v24, %v188_v14 }
  0xba   :  { %v343_v1 = vpop.f32.mrf.mxu2 }
  0xbb   :  { %v344_v32 = vadd.f32 %v343_v1, %v290_v28 }
  0xbd   :  { %v383_v2 = vadd.f32 %v382_v36, %v344_v32 }
  0xcf   :  { %v451_v37 = vpop.f32.mrf.mxu0 }
  0xd0   :  { %v452_v38 = vadd.f32 %v451_v37, %v383_v2 }
  0xd8   :  { %v488_v41 = vpop.f32.mrf.mxu1 }
  0xd9   :  { %v489_v42 = vadd.f32 %v488_v41, %v452_v38 }
  0xdb   :  { %v491_v43 = vmax.f32 %v489_v42, 1e-24 }
  0xdd   :  { %755 = vrsqrt.f32 %v491_v43  ;;  %vm498_vm14 = vweird.f32 %v491_v43 }
  0xe3   :  { %v756_v47 = vpop.eup %755 }
  0xe4   :  { %v493_v48 = vmul.f32 %v756_v47, %v491_v43  ;;  %vm499_vm5 = vweird.f32 %v756_v47 }
  0xe5   :  { %vm500_vm12 = vmor %vm498_vm14, %vm499_vm5 }
  0xe6   :  { %v494_v51 = vmul.f32 %v756_v47, %v493_v48 }
  0xe8   :  { %v495_v52 = vmul.f32 0.5, %v494_v51 }
  0xea   :  { %v496_v56 = vsub.f32 1.5, %v495_v52 }
  0xec   :  { %v497_v57 = vmul.f32 %v756_v47, %v496_v56 }
  0xee   :  { %v501_v58 = vsel %vm500_vm12, %v756_v47, %v497_v57 }
  0xef   :  { %v504_v61 = vsel %vm502_vm8, %v501_v58, 0 }
  0xf0   :  { %v527_v62 = vand.u32 4294901760, %v504_v61 }
  0xf2   :  { %558 = vmatmul.f32.vlgmr.msrb.gmra.mxu3 %v527_v62  ;;  %v528_v3 = vsub.f32 %v504_v61, %v527_v62 }
  0xf3   :  { %748 = vmatpush.msk.msrb.mxu3 %vm506_vm13, %v697_v21 }
  0xf4   :  { %v529_v9 = vand.u32 4294901760, %v528_v3 }
  0xf6   :  { %v530_v13 = vsub.f32 %v528_v3, %v529_v9 }
  0xf8   :  { %v531_v19 = vand.u32 4294901760, %v530_v13 }
  0xfa   :  { %532 = vmatmul.f32.vlgmr.msrb.gmra.mxu2 %v531_v19  ;;  %606 = vmatmul.f32.vlgmr.msra.gmra.mxu3 %v529_v9 }
  0xfb   :  { %628 = vmatpush.msrb.mxu2 %v553_v29 }
 0x102   :  { %582 = vmatmul.f32.vlgmr.msra.gmra.mxu2 %v528_v3  ;;  %652 = vmatmul.f32.vlgmr.msrb.gmra.mxu3 %v527_v62 }
 0x10a   :  { %630 = vmatmul.f32.vlgmr.msrb.gmra.mxu2 %v527_v62 }
 0x175   :  { %v559_v20 = vpop.f32.mrf.mxu3 }
 0x17d   :  { %v533_v26 = vpop.f32.mrf.mxu2  ;;  %v607_v30 = vpop.f32.mrf.mxu3 }
 0x17e   :  { %v560_v49 = vadd.f32 %v559_v20, %v533_v26 }
 0x185   :  { %v583_v40 = vpop.f32.mrf.mxu2  ;;  %v653_v5 = vpop.f32.mrf.mxu3 }
 0x186   :  { %v584_v54 = vadd.f32 %v583_v40, %v560_v49 }
 0x188   :  { %v608_v55 = vadd.f32 %v607_v30, %v584_v54 }
 0x18d   :  { %v631_v60 = vpop.f32.mrf.mxu2 }
 0x18e   :  { %v632_v63 = vadd.f32 %v631_v60, %v608_v55 }
 0x190   :  { %v654_v7 = vadd.f32 %v653_v5, %v632_v63 }
 0x192   :  { %v656_v10 = vmul.f32 %v654_v7, %v1173_v50 }
 0x194   :  { %v661_v34 = vmul.f32 %v754_v8, %v656_v10 }
 0x196   :  { %662 = vst [vmem:[#allocation7] sm:$0xf] %v661_v34 }
 0x197   :  { %673 = dma.vmem_to_hbm [thread:$0]  %s669_s1, 64, %s671_s21, [#allocation4]  }
 0x198   :  { %833 = dma.done.wait [#allocation4], 64  }
 0x199   :  { %834 = vsyncadd [#allocation4], 4294967232 }
 0x19a   :  { %678 = vsyncpa [#allocation3], 1 }
 0x19b   :  { %679 = vsyncpa [#allocation6], 1 }
 0x19c   :  { %680 = vsyncpa [#allocation4], 1 }

</bundles_post_ra>
